<compile_context>
chip_gen: v5e
topology: v5e:2x2
jax: 0.10.0
libtpu: 0.0.40
codegen_flags: <defaults>
</compile_context>

<pallas_src>
import functools

import jax
import jax.numpy as jnp
import numpy as np
from jax.experimental import pallas as pl
from jax.experimental.pallas import tpu as pltpu


# ---------------------------------------------------------------------------
# Pallas kernel: fused clamp + single MXU matmul + bias add on one (TM,TN) tile.
# ---------------------------------------------------------------------------
def negnet_conv_kernel(p_ref, w_ref, b_ref, o_ref):
    """p_ref: (TM, K) bf16 patches; w_ref: (2K, TN) bf16 = [W_pos; W_neg];
    b_ref: (1, TN) f32 (clamp(b,min=0)+clamp(b,max=0) == b); o_ref: (TM, TN) f32."""
    p = p_ref[...].astype(jnp.float32)                  # clamp in f32 (v5e VPU path)
    x_neg = jnp.minimum(p, 0.0).astype(jnp.bfloat16)    # pairs with W_pos
    x_pos = jnp.maximum(p, 0.0).astype(jnp.bfloat16)    # pairs with W_neg
    x_cat = jnp.concatenate([x_neg, x_pos], axis=-1)    # (TM, 2K) -> one MXU stream
    acc = jnp.dot(x_cat, w_ref[...], preferred_element_type=jnp.float32)
    o_ref[...] = acc + b_ref[...]


def _round_up(x, m):
    return ((x + m - 1) // m) * m


def _im2col_nchw(x, kh, kw, stride, padding):
    """x: (N, C, H, W) -> patches (N*OH*OW, C*kh*kw); K ordered (C, kh, kw)."""
    n, c, h, w = x.shape
    xp = jnp.pad(x, ((0, 0), (0, 0), (padding, padding), (padding, padding)))
    oh = (h + 2 * padding - kh) // stride + 1
    ow = (w + 2 * padding - kw) // stride + 1
    pieces = []
    for i in range(kh):
        for j in range(kw):
            pieces.append(xp[:, :, i:i + stride * oh:stride, j:j + stride * ow:stride])
    pat = jnp.stack(pieces, axis=2)                      # (N, C, kh*kw, OH, OW)
    pat = pat.reshape(n, c * kh * kw, oh, ow)            # K ordered (C, kh, kw)
    pat = jnp.transpose(pat, (0, 2, 3, 1)).reshape(n * oh * ow, c * kh * kw)
    return pat, oh, ow


@functools.partial(jax.jit,
                   static_argnames=("stride", "padding", "ignorebias", "nhwc_out"))
def negnet_conv(x, weight, bias, *, stride=1, padding=1, ignorebias=False,
                nhwc_out=False):
    """NegNetConv forward.
    x: (N, Cin, H, W) f32 NCHW; weight: (Cout, Cin, kh, kw) f32; bias: (Cout,) or None.
    """
    n, cin, h, w = x.shape
    cout, cin_w, kh, kw = weight.shape
    assert cin == cin_w
    k = cin * kh * kw

    # im2col in bf16: halves glue-code HBM traffic, MXU consumes bf16 anyway.
    patches, oh, ow = _im2col_nchw(x.astype(jnp.bfloat16), kh, kw, stride, padding)
    m = patches.shape[0]

    # Weights: clamp in f32, stack [W_pos; W_neg] to (2K, Cout), cast to bf16.
    w2d = weight.reshape(cout, k)
    w_cat = jnp.concatenate([jnp.maximum(w2d, 0.0), jnp.minimum(w2d, 0.0)], axis=1)
    w_cat = w_cat.T.astype(jnp.bfloat16)                 # (2K, Cout)

    # clamp(b, min=0) + clamp(b, max=0) == b -> combined bias is just b.
    if ignorebias or bias is None:
        b2d = jnp.zeros((1, cout), dtype=jnp.float32)
    else:
        b2d = bias.reshape(1, cout).astype(jnp.float32)

    # --- tiling --------------------------------------------------------------
    # Lane-dense Cout (multiple of 128); 256-wide tiles when possible (v6e MXU).
    cout_pad = _round_up(cout, 128)
    tn = 256 if cout_pad % 256 == 0 else 128

    # Big M tiles amortize the ~0.35us per-grid-step overhead, but keep >= 2
    # steps on the parallel M axis so both v7x TensorCores get work.
    if m >= 2 * 512:
        tm = 512
    elif m >= 2 * 256:
        tm = 256
    else:
        tm = max(8, _round_up(m, 8))
    m_pad = _round_up(m, tm)

    if m_pad != m:
        patches = jnp.pad(patches, ((0, m_pad - m), (0, 0)))
    if cout_pad != cout:
        w_cat = jnp.pad(w_cat, ((0, 0), (0, cout_pad - cout)))
        b2d = jnp.pad(b2d, ((0, 0), (0, cout_pad - cout)))

    grid = (m_pad // tm, cout_pad // tn)

    # Explicit VMEM budget: double-buffered pipeline blocks + slack for the
    # in-kernel f32 temporaries, capped below v7x's 64 MiB physical VMEM.
    pipeline_bytes = 2 * (tm * k * 2 + 2 * k * tn * 2 + tn * 4 + tm * tn * 4)
    vmem_limit = int(min(max(4 * pipeline_bytes, 8 * 2**20), 48 * 2**20))

    out_flat = pl.pallas_call(
        negnet_conv_kernel,
        out_shape=jax.ShapeDtypeStruct((m_pad, cout_pad), jnp.float32),
        grid=grid,
        in_specs=[
            pl.BlockSpec((tm, k), lambda i, j: (i, 0)),        # patches tile (bf16)
            pl.BlockSpec((2 * k, tn), lambda i, j: (0, j)),    # [W_pos; W_neg] tile
            pl.BlockSpec((1, tn), lambda i, j: (0, j)),        # bias tile
        ],
        out_specs=pl.BlockSpec((tm, tn), lambda i, j: (i, j)),
        compiler_params=pltpu.CompilerParams(
            dimension_semantics=("parallel", "parallel"),
            vmem_limit_bytes=vmem_limit),
    )(patches, w_cat, b2d)

    out = out_flat[:m, :cout].reshape(n, oh, ow, cout)    # drop M / Cout padding
    if nhwc_out:
        return out                                        # skip epilogue transpose
    return jnp.transpose(out, (0, 3, 1, 2))               # NCHW (module semantics)


# ---------------------------------------------------------------------------
# Pure-JAX reference mirroring the PyTorch forward.
# ---------------------------------------------------------------------------
def _reference(x, weight, bias, stride, padding, ignorebias):
    w_pos = jnp.maximum(weight, 0.0)
    w_neg = jnp.minimum(weight, 0.0)
    dn = jax.lax.conv_dimension_numbers(x.shape, weight.shape,
                                        ("NCHW", "OIHW", "NCHW"))
    conv = functools.partial(
        jax.lax.conv_general_dilated,
        window_strides=(stride, stride),
        padding=[(padding, padding), (padding, padding)],
        dimension_numbers=dn,
        precision=jax.lax.Precision.HIGHEST)
    vp = conv(jnp.minimum(x, 0.0), w_pos)
    vn = conv(jnp.maximum(x, 0.0), w_neg)
    out = vp + vn
    if (not ignorebias) and bias is not None:
        out = out + bias.reshape(1, -1, 1, 1)   # clamp(b,min)+clamp(b,max) == b
    return out


if __name__ == "__main__":
    key = jax.random.PRNGKey(0)
    kx, kw_, kb = jax.random.split(key, 3)

    # Small shapes: batch=2, Cin=4, 16x16 spatial, Cout=8, 3x3 conv, stride 1, pad 1.
    N, Cin, H, W = 2, 4, 16, 16
    Cout, KH, KW = 8, 3, 3
    stride, padding = 1, 1
    ignorebias = False

    x = jax.random.normal(kx, (N, Cin, H, W), dtype=jnp.float32)
    weight = jax.random.normal(kw_, (Cout, Cin, KH, KW), dtype=jnp.float32) * 0.1
    bias = jax.random.normal(kb, (Cout,), dtype=jnp.float32) * 0.1

    out = negnet_conv(x, weight, bias, stride=stride, padding=padding,
                      ignorebias=ignorebias)
    out = jax.block_until_ready(out)

    # Reference fed with bf16-rounded inputs (kernel uses bf16 MXU operands with
    # f32 accumulation), so only accumulation-order noise remains.
    x_r = x.astype(jnp.bfloat16).astype(jnp.float32)
    w_r = weight.astype(jnp.bfloat16).astype(jnp.float32)
    ref = _reference(x_r, w_r, bias, stride, padding, ignorebias)
    ref = jax.block_until_ready(ref)

    if not np.allclose(np.asarray(out), np.asarray(ref), rtol=1e-3, atol=1e-3):
        max_err = np.max(np.abs(np.asarray(out) - np.asarray(ref)))
        raise AssertionError(
            f"Pallas NegNetConv does not match reference (max abs err {max_err})")

    print("KERNEL_OK")
</pallas_src>

<mosaic_0001>
module attributes {stable_mosaic.version = 11 : i64} {
  func.func @negnet_conv_kernel(%arg0: i32, %arg1: i32, %arg2: memref<256x36xbf16, #tpu.memory_space<vmem>>, %arg3: memref<72x128xbf16, #tpu.memory_space<vmem>>, %arg4: memref<1x128xf32, #tpu.memory_space<vmem>>, %arg5: memref<256x128xf32, #tpu.memory_space<vmem>>) attributes {dimension_semantics = [#tpu.dimension_semantics<parallel>, #tpu.dimension_semantics<parallel>], iteration_bounds = array<i64: 2, 1>, scalar_prefetch = 0 : i64, scratch_operands = 0 : i64, tpu.core_type = #tpu.core_type<tc>, window_params = [{transform_indices = @transform_0, window_bounds = array<i64: 256, 36>}, {transform_indices = @transform_1, window_bounds = array<i64: 72, 128>}, {transform_indices = @transform_2, window_bounds = array<i64: 1, 128>}, {transform_indices = @transform_3, window_bounds = array<i64: 256, 128>}]} {
    %c0 = arith.constant 0 : index
    %c0_0 = arith.constant 0 : index
    %0 = vector.load %arg2[%c0, %c0_0] : memref<256x36xbf16, #tpu.memory_space<vmem>>, vector<256x36xbf16>
    %1 = arith.extf %0 : vector<256x36xbf16> to vector<256x36xf32>
    %cst = arith.constant 0.000000e+00 : f32
    %2 = vector.broadcast %cst : f32 to vector<256x36xf32>
    %3 = arith.minimumf %1, %2 : vector<256x36xf32>
    %4 = arith.truncf %3 : vector<256x36xf32> to vector<256x36xbf16>
    %cst_1 = arith.constant 0.000000e+00 : f32
    %5 = vector.broadcast %cst_1 : f32 to vector<256x36xf32>
    %6 = arith.maximumf %1, %5 : vector<256x36xf32>
    %7 = arith.truncf %6 : vector<256x36xf32> to vector<256x36xbf16>
    %8 = tpu.concatenate %4, %7 in 1 : vector<256x36xbf16>, vector<256x36xbf16> -> vector<256x72xbf16>
    %c0_2 = arith.constant 0 : index
    %c0_3 = arith.constant 0 : index
    %9 = vector.load %arg3[%c0_2, %c0_3] : memref<72x128xbf16, #tpu.memory_space<vmem>>, vector<72x128xbf16>
    %cst_4 = arith.constant dense<0.000000e+00> : vector<256x128xf32>
    %10 = tpu.matmul %8, %9, %cst_4 {dimension_numbers = #tpu.dot_dimension_numbers<[1], [0], [0], [1], [0, 0, 1, 1], [], []>} : vector<256x72xbf16>, vector<72x128xbf16>, vector<256x128xf32> -> vector<256x128xf32>
    %c0_5 = arith.constant 0 : index
    %c0_6 = arith.constant 0 : index
    %11 = vector.load %arg4[%c0_5, %c0_6] : memref<1x128xf32, #tpu.memory_space<vmem>>, vector<1x128xf32>
    %12 = vector.broadcast %11 : vector<1x128xf32> to vector<256x128xf32>
    %13 = arith.addf %10, %12 : vector<256x128xf32>
    %c0_7 = arith.constant 0 : index
    %c0_8 = arith.constant 0 : index
    %14 = vector.load %arg5[%c0_7, %c0_8] : memref<256x128xf32, #tpu.memory_space<vmem>>, vector<256x128xf32>
    tpu.vector_store %arg5[%c0_7, %c0_8], %13 {strides = array<i32>} : memref<256x128xf32, #tpu.memory_space<vmem>>, vector<256x128xf32>,
    return
  }
  func.func @transform_0(%arg0: i32, %arg1: i32) -> (i32, i32) {
    %c0_i32 = arith.constant 0 : i32
    %c0_i32_0 = arith.constant 0 : i32
    return %arg0, %c0_i32 : i32, i32
  }
  func.func @transform_1(%arg0: i32, %arg1: i32) -> (i32, i32) {
    %c0_i32 = arith.constant 0 : i32
    %c0_i32_0 = arith.constant 0 : i32
    return %c0_i32, %arg1 : i32, i32
  }
  func.func @transform_2(%arg0: i32, %arg1: i32) -> (i32, i32) {
    %c0_i32 = arith.constant 0 : i32
    %c0_i32_0 = arith.constant 0 : i32
    return %c0_i32, %arg1 : i32, i32
  }
  func.func @transform_3(%arg0: i32, %arg1: i32) -> (i32, i32) {
    %c0_i32 = arith.constant 0 : i32
    return %arg0, %arg1 : i32, i32
  }
}

</mosaic_0001>

<bundles_post_ra>
// kernel: negnet_conv.1
= control target key start
LH: loop header
LB: loop body
LE: loop exit
PB: predicated region body
PF: predicated region fallthrough
CT: control target
= control target key end

     0   :  { %s1173_s12 = smov 0   ;;  %s1175_s13 = smov 0   ;;  %s1554_s0 = inlined_call_operand.vmem [shape: bf16[512,36], index: 0, kind: input, shape index: {}]   ;;  %s1555_s1 = inlined_call_operand.vmem [shape: bf16[72,128], index: 1, kind: input, shape index: {}]   ;;  %s1556_s2 = inlined_call_operand.vmem [shape: f32[1,128], index: 2, kind: input, shape index: {}]   ;;  %s1557_s3 = inlined_call_operand.vmem [shape: f32[512,128], index: 3, kind: output, shape index: {}]  }
   0x1   :  { %s1177_s14 = smov 0  }
   0x2 LB: > { %s25_s15 = sadd.s32 1, %s1146_s13  ;;  %p965_p0 = scmp.ge.s32.totalorder %s1150_s14, 1  ;;  %s1150_s14 = sphi %s1177_s14, %s13_s14   ;;  %s1146_s13 = sphi %s1175_s13, %s1575_s13   ;;  %s1142_s12 = sphi %s1173_s12, %s1574_s12  }
   0x3   : > { %p27_p1 = scmp.ge.s32.totalorder %s25_s15, 2  ;;  %p169_p2 = scmp.lt.s32.totalorder %s1150_s14, 3 }
   0x5   : > { %s1577_s15 = smov (%p27_p1, %s25_s15), 0  ;;  %p170_p3 = pnand %p965_p0, %p169_p2 }
   0x6   : > { %s966_s16 = sshll.u32 (!%p170_p3), %s1142_s12, 5  ;;  %s1152_s21 = smov (!%p170_p3), 36  }
   0x7   : > { %173 = sbr.rel (%p170_p3) target bundleno = 341 (0x155), region = 32  ;;  %p204_p4 = scmp.lt.s32.totalorder (!%p170_p3), %s966_s16, 63 }
   0xc   : > { %s1579_s16 = smov (!%p204_p4, %s966_s16), 63  ;;  %vm732_vm0 = vcmask 1043456   ;;  %vm610_vm1 = vcmask 293888   ;;  %vm699_vm2 = vcmask 588800  }
   0xd   : > { %s967_s17 = sshll.u32 %s1579_s16, 2  ;;  %s969_s5 = sshll.u32 %s1579_s16, 3 }
   0xe   : > { %s1197_s20 = scalar_lea.vmem %s1554_s0, %s967_s17  ;;  %s1479_s10 = scalar_lea.vmem %s1557_s3, %s969_s5 }
   0xf   : > { %v1200_v0 = vld [vmem:[%s1197_s20 + $0x40] sm:$0xff]   ;;  %v1236_v24 = vld [vmem:[%s1197_s20 + $0x8] sm:$0xff]   ;;  %v1243_v36 = vld [vmem:[%s1197_s20 + $0x10] sm:$0xff]  }
  0x10   : > { %v1203_v1 = vld [vmem:[%s1197_s20] sm:$0xff]   ;;  %v1042_v3 = vunpack.c.l.bf16 %v1200_v0  ;;  %v1043_v4 = vunpack.c.h.bf16 %v1200_v0  ;;  %v1239_v33 = vld [vmem:[%s1197_s20 + $0x28] sm:$0xff]   ;;  %v1014_v35 = vunpack.c.l.bf16 %v1236_v24  ;;  %v1015_v40 = vunpack.c.h.bf16 %v1236_v24  ;;  %v1272_v63 = vld [vmem:[%s1197_s20 + $0x70] sm:$0xff]  }
  0x11   : > { %v1206_v2 = vld [vmem:[%s1197_s20 + $0x60] sm:$0xff]   ;;  %v1010_v5 = vunpack.c.l.bf16 %v1203_v1  ;;  %v1011_v6 = vunpack.c.h.bf16 %v1203_v1  ;;  %v1247_v41 = vld [vmem:[%s1197_s20 + $0x48] sm:$0xff]   ;;  %v1030_v44 = vunpack.c.l.bf16 %v1239_v33  ;;  %v1031_v45 = vunpack.c.h.bf16 %v1239_v33 }
  0x12   : > { %v1213_v7 = vld [vmem:[%s1197_s20 + $0x20] sm:$0xff]   ;;  %v1058_v8 = vunpack.c.l.bf16 %v1206_v2  ;;  %v1059_v9 = vunpack.c.h.bf16 %v1206_v2  ;;  %v370_v12 = vmax.f32 %v1042_v3, 0.0  ;;  %v371_v13 = vmax.f32 %v1043_v4, 0.0 }
  0x13   : > { %v1026_v10 = vunpack.c.l.bf16 %v1213_v7  ;;  %v1027_v11 = vunpack.c.h.bf16 %v1213_v7  ;;  %v354_v14 = vmax.f32 %v1010_v5, 0.0  ;;  %v355_v15 = vmax.f32 %v1011_v6, 0.0 }
  0x14   : > { %v402_v16 = vpack.c.bf16 %v370_v12, %v370_v12  ;;  %v403_v17 = vpack.c.bf16 %v371_v13, %v371_v13  ;;  %v378_v18 = vmax.f32 %v1058_v8, 0.0  ;;  %v379_v19 = vmax.f32 %v1059_v9, 0.0 }
  0x15   : > { %v386_v20 = vpack.c.bf16 %v354_v14, %v354_v14  ;;  %v387_v21 = vpack.c.bf16 %v355_v15, %v355_v15  ;;  %v362_v22 = vmax.f32 %v1026_v10, 0.0  ;;  %v363_v23 = vmax.f32 %v1027_v11, 0.0  ;;  %v1277_v14 = vld [vmem:[%s1197_s20 + $0x68] sm:$0xff]  }
  0x16   : > { %v546_v25 = vunpack.c.l.b16 %v402_v16  ;;  %v547_v26 = vunpack.c.l.b16 %v403_v17  ;;  %v410_v27 = vpack.c.bf16 %v378_v18, %v378_v18  ;;  %v411_v28 = vpack.c.bf16 %v379_v19, %v379_v19  ;;  %v1280_v19 = vld [vmem:[%s1197_s20 + $0x58] sm:$0xff]  }
  0x17   : > { %v530_v29 = vunpack.c.l.b16 %v386_v20  ;;  %v531_v30 = vunpack.c.l.b16 %v387_v21  ;;  %v394_v31 = vpack.c.bf16 %v362_v22, %v362_v22  ;;  %v395_v32 = vpack.c.bf16 %v363_v23, %v363_v23 }
  0x18   : > { %v570_v34 = vpack.c.b16 %v547_v26, %v546_v25  ;;  %v554_v38 = vunpack.c.l.b16 %v410_v27  ;;  %v555_v39 = vunpack.c.l.b16 %v411_v28  ;;  %v356_v43 = vmax.f32 %v1014_v35, 0.0  ;;  %v1285_v25 = vld [vmem:[%s1197_s20 + $0x50] sm:$0xff]  }
  0x19   : > { %v562_v37 = vpack.c.b16 %v531_v30, %v530_v29  ;;  %v538_v42 = vunpack.c.l.b16 %v394_v31  ;;  %v539_v46 = vunpack.c.l.b16 %v395_v32  ;;  %v357_v47 = vmax.f32 %v1015_v40, 0.0 }
  0x1a   : > { %594 = vrot.lane.b32.xlu0 %v570_v34, %s1152_s21  ;;  %v1018_v48 = vunpack.c.l.bf16 %v1243_v36  ;;  %v1019_v49 = vunpack.c.h.bf16 %v1243_v36  ;;  %v364_v50 = vmax.f32 %v1030_v44, 0.0  ;;  %v365_v51 = vmax.f32 %v1031_v45, 0.0 }
  0x1b   : > { %578 = vrot.lane.b32.xlu1 %v562_v37, %s1152_s21  ;;  %v1046_v52 = vunpack.c.l.bf16 %v1247_v41  ;;  %v388_v53 = vpack.c.bf16 %v356_v43, %v356_v43  ;;  %v389_v54 = vpack.c.bf16 %v357_v47, %v357_v47  ;;  %v1047_v56 = vunpack.c.h.bf16 %v1247_v41 }
  0x1c   : > { %v358_v55 = vmax.f32 %v1018_v48, 0.0  ;;  %v574_v57 = vpack.c.b16 %v555_v39, %v554_v38  ;;  %v396_v58 = vpack.c.bf16 %v364_v50, %v364_v50  ;;  %v397_v59 = vpack.c.bf16 %v365_v51, %v365_v51 }
  0x1d   : > { %v372_v60 = vmax.f32 %v1046_v52, 0.0  ;;  %v566_v61 = vpack.c.b16 %v539_v46, %v538_v42  ;;  %v359_v62 = vmax.f32 %v1019_v49, 0.0  ;;  %v373_v12 = vmax.f32 %v1047_v56, 0.0 }
  0x1e   : > { %v532_v15 = vunpack.c.l.b16 %v388_v53  ;;  %v533_v16 = vunpack.c.l.b16 %v389_v54  ;;  %v540_v17 = vunpack.c.l.b16 %v396_v58  ;;  %v390_v18 = vpack.c.bf16 %v358_v55, %v358_v55 }
  0x1f   : > { %v404_v13 = vpack.c.bf16 %v372_v60, %v372_v60  ;;  %v541_v20 = vunpack.c.l.b16 %v397_v59  ;;  %v405_v21 = vpack.c.bf16 %v373_v12, %v373_v12  ;;  %v1564_v23 = vunpack.c.l.bf16 %v1272_v63  ;;  %v1313_v12 = vld [vmem:[%s1197_s20 + $0x78] sm:$0xff]  }
  0x20   : > { %v391_v26 = vpack.c.bf16 %v359_v62, %v359_v62  ;;  %v1562_v27 = vunpack.c.h.bf16 %v1272_v63  ;;  %v1062_v28 = vunpack.c.l.bf16 %v1277_v14  ;;  %v1063_v29 = vunpack.c.h.bf16 %v1277_v14 }
  0x21   : > { %v548_v22 = vunpack.c.l.b16 %v404_v13  ;;  %v549_v30 = vunpack.c.l.b16 %v405_v21  ;;  %v382_v31 = vmax.f32 %v1564_v23, 0.0  ;;  %v1561_v32 = vunpack.c.l.bf16 %v1280_v19 }
  0x22   : > { %602 = vrot.lane.b32.xlu0 %v574_v57, %s1152_s21  ;;  %v1560_v34 = vunpack.c.h.bf16 %v1280_v19  ;;  %v383_v37 = vmax.f32 %v1562_v27, 0.0  ;;  %v380_v38 = vmax.f32 %v1062_v28, 0.0  ;;  %v381_v39 = vmax.f32 %v1063_v29, 0.0 }
  0x23   : > { %586 = vrot.lane.b32.xlu1 %v566_v61, %s1152_s21  ;;  %v1050_v42 = vunpack.c.l.bf16 %v1285_v25  ;;  %v563_v43 = vpack.c.b16 %v533_v16, %v532_v15  ;;  %v567_v46 = vpack.c.b16 %v541_v20, %v540_v17  ;;  %v571_v47 = vpack.c.b16 %v549_v30, %v548_v22  ;;  %v1317_v16 = vld [vmem:[%s1197_s20 + $0x38] sm:$0xff]   ;;  %v1320_v17 = vld [vmem:[%s1197_s20 + $0x30] sm:$0xff]  }
  0x24   : > { %v414_v50 = vpack.c.bf16 %v382_v31, %v382_v31  ;;  %v415_v51 = vpack.c.bf16 %v383_v37, %v383_v37  ;;  %v412_v53 = vpack.c.bf16 %v380_v38, %v380_v38  ;;  %v413_v54 = vpack.c.bf16 %v381_v39, %v381_v39 }
  0x25   : > { %v1051_v55 = vunpack.c.h.bf16 %v1285_v25  ;;  %596 = vrot.lane.b32.xlu2 %v571_v47, %s1152_s21  ;;  %v376_v57 = vmax.f32 %v1561_v32, 0.0  ;;  %v374_v58 = vmax.f32 %v1050_v42, 0.0  ;;  %v377_v61 = vmax.f32 %v1560_v34, 0.0 }
  0x26   : > { %v556_v59 = vunpack.c.l.b16 %v412_v53  ;;  %v557_v60 = vunpack.c.l.b16 %v413_v54  ;;  %v558_v13 = vunpack.c.l.b16 %v414_v50  ;;  %v559_v15 = vunpack.c.l.b16 %v415_v51 }
  0x27   : > { %v375_v62 = vmax.f32 %v1051_v55, 0.0  ;;  %v534_v20 = vunpack.c.l.b16 %v390_v18  ;;  %v535_v21 = vunpack.c.l.b16 %v391_v26  ;;  %v406_v22 = vpack.c.bf16 %v374_v58, %v374_v58 }
  0x28   : > { %v575_v31 = vpack.c.b16 %v557_v60, %v556_v59  ;;  %v408_v37 = vpack.c.bf16 %v376_v57, %v376_v57  ;;  %v1559_v38 = vunpack.c.l.bf16 %v1313_v12  ;;  %v409_v39 = vpack.c.bf16 %v377_v61, %v377_v61  ;;  %v1334_v59 = vld [vmem:[%s1197_s20 + $0x18] sm:$0xff]   ;;  %v667_v60 = vld [vmem:[%s1555_s1 + $0x20] sm:$0xf] }
  0x29   : > { %v407_v30 = vpack.c.bf16 %v375_v62, %v375_v62  ;;  %v1558_v47 = vunpack.c.h.bf16 %v1313_v12  ;;  %v1034_v50 = vunpack.c.l.bf16 %v1320_v17  ;;  %v576_v51 = vpack.c.b16 %v559_v15, %v558_v13 }
  0x2a   : > { %580 = vrot.lane.b32.xlu0 %v563_v43, %s1152_s21  ;;  %v1563_v43 = vunpack.c.l.bf16 %v1317_v16  ;;  %v1039_v53 = vunpack.c.h.bf16 %v1317_v16  ;;  %v384_v18 = vmax.f32 %v1559_v38, 0.0  ;;  %v1565_v26 = vunpack.c.h.bf16 %v1320_v17 }
  0x2b   : > { %588 = vrot.lane.b32.xlu1 %v567_v46, %s1152_s21  ;;  %v564_v46 = vpack.c.b16 %v535_v21, %v534_v20  ;;  %v550_v54 = vunpack.c.l.b16 %v406_v22  ;;  %v551_v57 = vunpack.c.l.b16 %v407_v30  ;;  %v385_v58 = vmax.f32 %v1558_v47, 0.0 }
  0x2c   : > { %v416_v61 = vpack.c.bf16 %v384_v18, %v384_v18  ;;  %v366_v62 = vmax.f32 %v1034_v50, 0.0  ;;  %v367_v13 = vmax.f32 %v1565_v26, 0.0  ;;  %v552_v15 = vunpack.c.l.b16 %v408_v37 }
  0x2d   : > { %604 = vrot.lane.b32.xlu2 %v575_v31, %s1152_s21  ;;  %v553_v20 = vunpack.c.l.b16 %v409_v39  ;;  %v417_v21 = vpack.c.bf16 %v385_v58, %v385_v58  ;;  %v368_v22 = vmax.f32 %v1563_v43, 0.0  ;;  %v369_v30 = vmax.f32 %v1039_v53, 0.0 }
  0x2e   : > { %v1022_v31 = vunpack.c.l.bf16 %v1334_v59  ;;  %v689_v18 = vunpack.c.l.b16 %v667_v60  ;;  %v572_v47 = vpack.c.b16 %v551_v57, %v550_v54  ;;  %v560_v38 = vunpack.c.l.b16 %v416_v61 }
  0x2f   : > { %v561_v34 = vunpack.c.l.b16 %v417_v21  ;;  %v1023_v37 = vunpack.c.h.bf16 %v1334_v59  ;;  %v398_v39 = vpack.c.bf16 %v366_v62, %v366_v62  ;;  %v399_v58 = vpack.c.bf16 %v367_v13, %v367_v13 }
  0x30   : > { %v694_v32 = vpack.c.b16 %v689_v18, %v689_v18  ;;  %v400_v27 = vpack.c.bf16 %v368_v22, %v368_v22  ;;  %v401_v43 = vpack.c.bf16 %v369_v30, %v369_v30  ;;  %v360_v60 = vmax.f32 %v1022_v31, 0.0 }
  0x31   : > { %v577_v26 = vpack.c.b16 %v561_v34, %v560_v38  ;;  %v542_v54 = vunpack.c.l.b16 %v398_v39  ;;  %v543_v57 = vunpack.c.l.b16 %v399_v58  ;;  %v361_v61 = vmax.f32 %v1023_v37, 0.0  ;;  %v1006_v38 = vld [vmem:[%s1555_s1 + $0x10] sm:$0xff] }
  0x32   : > { %606 = vrot.lane.b32.xlu0 %v576_v51, %s1152_s21  ;;  %v573_v51 = vpack.c.b16 %v553_v20, %v552_v15  ;;  %v734_v23 = vsel %vm732_vm0, %v694_v32, 0  ;;  %v544_v32 = vunpack.c.l.b16 %v400_v27  ;;  %v545_v34 = vunpack.c.l.b16 %v401_v43 }
  0x33   : > { %582 = vrot.lane.b32.xlu1 %v564_v46, %s1152_s21  ;;  %739 = vmatpush.bf16.msra.mxu0 %v734_v23  ;;  %v1007_v46 = vld [vmem:[%s1555_s1 + $0x18] sm:$0xff]  ;;  %v392_v62 = vpack.c.bf16 %v360_v60, %v360_v60  ;;  %v393_v13 = vpack.c.bf16 %v361_v61, %v361_v61  ;;  %v307_v21 = vmin.f32 %v1043_v4, 0.0  ;;  %v306_v22 = vmin.f32 %v1042_v3, 0.0 }
  0x34   : > { %1088 = vmatpush.bf16.msra.mxu2 %v734_v23  ;;  %1087 = vmatpush.bf16.msra.mxu1 %v734_v23  ;;  %v569_v15 = vpack.c.b16 %v545_v34, %v544_v32  ;;  %v291_v30 = vmin.f32 %v1011_v6, 0.0  ;;  %v290_v18 = vmin.f32 %v1010_v5, 0.0  ;;  %v309_v0 = vmin.f32 %v1047_v56, 0.0 }
  0x35   : > { %598 = vrot.lane.b32.xlu2 %v572_v47, %s1152_s21  ;;  %1089 = vmatpush.bf16.msra.mxu3 %v734_v23  ;;  %v568_v47 = vpack.c.b16 %v543_v57, %v542_v54  ;;  %v1005_v23 = vld [vmem:[%s1555_s1 + $0x8] sm:$0xff]  ;;  %v536_v27 = vunpack.c.l.b16 %v392_v62  ;;  %v537_v43 = vunpack.c.l.b16 %v393_v13  ;;  %v308_v3 = vmin.f32 %v1046_v52, 0.0 }
  0x36   : > { %v322_v39 = vpack.c.bf16 %v290_v18, %v290_v18  ;;  %v323_v58 = vpack.c.bf16 %v291_v30, %v291_v30  ;;  %v341_v6 = vpack.c.bf16 %v309_v0, %v309_v0  ;;  %v315_v62 = vmin.f32 %v1059_v9, 0.0 }
  0x37   : > { %740 = vmatpush.bf16.msra.mxu0 %v1007_v46  ;;  %v565_v20 = vpack.c.b16 %v537_v43, %v536_v27  ;;  %v340_v4 = vpack.c.bf16 %v308_v3, %v308_v3  ;;  %v298_v13 = vmin.f32 %v1026_v10, 0.0  ;;  %v299_v56 = vmin.f32 %v1027_v11, 0.0 }
  0x38   : > { %1091 = vmatpush.bf16.msra.mxu2 %v1007_v46  ;;  %1090 = vmatpush.bf16.msra.mxu1 %v1007_v46  ;;  %v450_v54 = vunpack.c.l.b16 %v322_v39  ;;  %v451_v57 = vunpack.c.l.b16 %v323_v58  ;;  %v469_v5 = vunpack.c.l.b16 %v341_v6  ;;  %v347_v41 = vpack.c.bf16 %v315_v62, %v315_v62 }
  0x39   : > { %1092 = vmatpush.bf16.msra.mxu3 %v1007_v46  ;;  %v339_v46 = vpack.c.bf16 %v307_v21, %v307_v21  ;;  %v468_v1 = vunpack.c.l.b16 %v340_v4  ;;  %v330_v52 = vpack.c.bf16 %v298_v13, %v298_v13  ;;  %v292_v2 = vmin.f32 %v1014_v35, 0.0 }
  0x3a   : > { %600 = vrot.lane.b32.xlu0 %v573_v51, %s1152_s21  ;;  %v338_v51 = vpack.c.bf16 %v306_v22, %v306_v22  ;;  %v482_v32 = vpack.c.b16 %v451_v57, %v450_v54  ;;  %v293_v9 = vmin.f32 %v1015_v40, 0.0  ;;  %v316_v58 = vmin.f32 %v1062_v28, 0.0 }
  0x3b   : > { %608 = vrot.lane.b32.xlu1 %v577_v26, %s1152_s21  ;;  %741 = vmatpush.bf16.msra.mxu0 %v1006_v38  ;;  %v1004_v26 = vld [vmem:[%s1555_s1] sm:$0xff]  ;;  %v467_v61 = vunpack.c.l.b16 %v339_v46  ;;  %v458_v10 = vunpack.c.l.b16 %v330_v52  ;;  %v324_v22 = vpack.c.bf16 %v292_v2, %v292_v2  ;;  %v317_v24 = vmin.f32 %v1063_v29, 0.0 }
  0x3c   : > { %1094 = vmatpush.bf16.msra.mxu2 %v1006_v38  ;;  %1093 = vmatpush.bf16.msra.mxu1 %v1006_v38  ;;  %v466_v60 = vunpack.c.l.b16 %v338_v51  ;;  %v325_v30 = vpack.c.bf16 %v293_v9, %v293_v9  ;;  %v300_v40 = vmin.f32 %v1030_v44, 0.0  ;;  %v301_v51 = vmin.f32 %v1031_v45, 0.0 }
  0x3d   : > { %590 = vrot.lane.b32.xlu2 %v568_v47, %s1152_s21  ;;  %1095 = vmatpush.bf16.msra.mxu3 %v1006_v38  ;;  %v491_v38 = vpack.c.b16 %v469_v5, %v468_v1  ;;  %v314_v47 = vmin.f32 %v1058_v8, 0.0  ;;  %v452_v57 = vunpack.c.l.b16 %v324_v22  ;;  %v348_v14 = vpack.c.bf16 %v316_v58, %v316_v58 }
  0x3e   : > { %v490_v34 = vpack.c.b16 %v467_v61, %v466_v60  ;;  %v453_v60 = vunpack.c.l.b16 %v325_v30  ;;  %v349_v28 = vpack.c.bf16 %v317_v24, %v317_v24  ;;  %v332_v29 = vpack.c.bf16 %v300_v40, %v300_v40 }
  0x3f   : > { %742 = vmatpush.bf16.msra.mxu0 %v1005_v23  ;;  %v310_v33 = vmin.f32 %v1050_v42, 0.0  ;;  %v311_v44 = vmin.f32 %v1051_v55, 0.0  ;;  %v476_v0 = vunpack.c.l.b16 %v348_v14  ;;  %v295_v62 = vmin.f32 %v1019_v49, 0.0 }
  0x40   : > { %1097 = vmatpush.bf16.msra.mxu2 %v1005_v23  ;;  %1096 = vmatpush.bf16.msra.mxu1 %v1005_v23  ;;  %v477_v3 = vunpack.c.l.b16 %v349_v28  ;;  %v460_v1 = vunpack.c.l.b16 %v332_v29  ;;  %v1566_v49 = vunpack.c.h.bf16 %v1320_v17  ;;  %v1570_v24 = vunpack.c.h.bf16 %v1280_v19 }
  0x41   : > { %1098 = vmatpush.bf16.msra.mxu3 %v1005_v23  ;;  %v331_v23 = vpack.c.bf16 %v299_v56, %v299_v56  ;;  %v342_v25 = vpack.c.bf16 %v310_v33, %v310_v33  ;;  %v343_v42 = vpack.c.bf16 %v311_v44, %v311_v44  ;;  %v1571_v59 = vunpack.c.l.bf16 %v1313_v12 }
  0x42   : > { %592 = vrot.lane.b32.xlu0 %v569_v15, %s1152_s21  ;;  %v346_v15 = vpack.c.bf16 %v314_v47, %v314_v47  ;;  %v294_v47 = vmin.f32 %v1018_v48, 0.0  ;;  %v495_v55 = vpack.c.b16 %v477_v3, %v476_v0  ;;  %v302_v48 = vmin.f32 %v1034_v50, 0.0 }
  0x43   : > { %743 = vmatpush.bf16.msra.mxu0 %v1004_v26  ;;  %v459_v11 = vunpack.c.l.b16 %v331_v23  ;;  %v470_v52 = vunpack.c.l.b16 %v342_v25  ;;  %v471_v23 = vunpack.c.l.b16 %v343_v42 }
  0x44   : > { %1100 = vmatpush.bf16.msra.mxu2 %v1004_v26  ;;  %1099 = vmatpush.bf16.msra.mxu1 %v1004_v26  ;;  %v474_v43 = vunpack.c.l.b16 %v346_v15  ;;  %v326_v56 = vpack.c.bf16 %v294_v47, %v294_v47  ;;  %v327_v15 = vpack.c.bf16 %v295_v62, %v295_v62  ;;  %v1573_v47 = vunpack.c.l.bf16 %v1317_v16 }
  0x45   : > { %584 = vrot.lane.b32.xlu2 %v565_v20, %s1152_s21  ;;  %1101 = vmatpush.bf16.msra.mxu3 %v1004_v26  ;;  %v475_v20 = vunpack.c.l.b16 %v347_v41  ;;  %v486_v18 = vpack.c.b16 %v459_v11, %v458_v10  ;;  %v334_v11 = vpack.c.bf16 %v302_v48, %v302_v48  ;;  %v492_v50 = vpack.c.b16 %v471_v23, %v470_v52 }
  0x46   : > { %v454_v9 = vunpack.c.l.b16 %v326_v56  ;;  %v304_v62 = vmin.f32 %v1573_v47, 0.0 }
  0x47   : > { %v494_v21 = vpack.c.b16 %v475_v20, %v474_v43  ;;  %v1567_v43 = vunpack.c.l.bf16 %v1272_v63 }
  0x7f   : > { %v597_v39 = vpop.permute.xlu2 %596 }
  0x80   : > { %v640_v45 = vsel %vm610_vm1, %v491_v38, %v597_v39  ;;  %v462_v39 = vunpack.c.l.b16 %v334_v11 }
  0x87   : > { %v605_v6 = vpop.permute.xlu2 %604 }
  0x88   : > { %v652_v36 = vsel %vm610_vm1, %v495_v55, %v605_v6 }
  0x8c   : > { %v595_v27 = vpop.permute.xlu0 %594 }
  0x8d   : > { %v579_v26 = vpop.permute.xlu1 %578  ;;  %v637_v8 = vsel %vm610_vm1, %v490_v34, %v595_v27  ;;  %v483_v34 = vpack.c.b16 %v453_v60, %v452_v57  ;;  %v303_v27 = vmin.f32 %v1566_v49, 0.0  ;;  %v296_v60 = vmin.f32 %v1022_v31, 0.0 }
  0x8e   : > { %v613_v7 = vsel %vm610_vm1, %v482_v32, %v579_v26  ;;  %994 = vmatmul.msk.bf16.vlgmr.msra.gmra.mxu2 %vm699_vm2, %v637_v8  ;;  %v333_v32 = vpack.c.bf16 %v301_v51, %v301_v51  ;;  %v318_v26 = vmin.f32 %v1567_v43, 0.0  ;;  %v1568_v8 = vunpack.c.h.bf16 %v1272_v63 }
  0x8f   : > { %986 = vmatmul.msk.bf16.vlgmr.msra.gmra.mxu0 %vm699_vm2, %v613_v7  ;;  %v455_v7 = vunpack.c.l.b16 %v327_v15  ;;  %v599_v10 = vpop.permute.xlu2 %598  ;;  %v1569_v63 = vunpack.c.l.bf16 %v1280_v19  ;;  %v328_v33 = vpack.c.bf16 %v296_v60, %v296_v60  ;;  %v336_v15 = vpack.c.bf16 %v304_v62, %v304_v62 }
  0x90   : > { %v461_v5 = vunpack.c.l.b16 %v333_v32  ;;  %v319_v20 = vmin.f32 %v1568_v8, 0.0  ;;  %v350_v17 = vpack.c.bf16 %v318_v26, %v318_v26  ;;  %v643_v40 = vsel %vm610_vm1, %v492_v50, %v599_v10 }
  0x91   : > { %v484_v30 = vpack.c.b16 %v455_v7, %v454_v9  ;;  %v312_v58 = vmin.f32 %v1569_v63, 0.0 }
  0x92   : > { %v487_v38 = vpack.c.b16 %v461_v5, %v460_v1  ;;  %v351_v22 = vpack.c.bf16 %v319_v20, %v319_v20  ;;  %v456_v1 = vunpack.c.l.b16 %v328_v33 }
  0x93   : > { %v344_v28 = vpack.c.bf16 %v312_v58, %v312_v58 }
  0x94   : > { %v603_v35 = vpop.permute.xlu0 %602 }
  0x95   : > { %v587_v46 = vpop.permute.xlu1 %586  ;;  %v649_v54 = vsel %vm610_vm1, %v494_v21, %v603_v35  ;;  %v335_v21 = vpack.c.bf16 %v303_v27, %v303_v27  ;;  %v313_v35 = vmin.f32 %v1570_v24, 0.0 }
  0x96   : > { %v625_v61 = vsel %vm610_vm1, %v486_v18, %v587_v46  ;;  %998 = vmatmul.msk.bf16.vlgmr.msra.gmra.mxu3 %vm699_vm2, %v649_v54  ;;  %v478_v46 = vunpack.c.l.b16 %v350_v17  ;;  %v479_v54 = vunpack.c.l.b16 %v351_v22 }
  0x97   : > { %990 = vmatmul.msk.bf16.vlgmr.msra.gmra.mxu1 %vm699_vm2, %v625_v61  ;;  %v463_v51 = vunpack.c.l.b16 %v335_v21  ;;  %v297_v61 = vmin.f32 %v1023_v37, 0.0  ;;  %v345_v29 = vpack.c.bf16 %v313_v35, %v313_v35  ;;  %v320_v37 = vmin.f32 %v1571_v59, 0.0 }
  0x98   : > { %v496_v32 = vpack.c.b16 %v479_v54, %v478_v46 }
  0x99   : > { %v488_v19 = vpack.c.b16 %v463_v51, %v462_v39  ;;  %v329_v44 = vpack.c.bf16 %v297_v61, %v297_v61  ;;  %v473_v0 = vunpack.c.l.b16 %v345_v29  ;;  %v352_v55 = vpack.c.bf16 %v320_v37, %v320_v37 }
  0x9b   : > { %v457_v5 = vunpack.c.l.b16 %v329_v44  ;;  %v480_v23 = vunpack.c.l.b16 %v352_v55 }
  0x9c   : > { %v581_v4 = vpop.permute.xlu0 %580 }
  0x9d   : > { %v616_v13 = vsel %vm610_vm1, %v483_v34, %v581_v4  ;;  %v589_v41 = vpop.permute.xlu1 %588  ;;  %v591_v34 = vpop.permute.xlu2 %590  ;;  %v1572_v4 = vunpack.c.h.bf16 %v1313_v12  ;;  %v485_v56 = vpack.c.b16 %v457_v5, %v456_v1 }
  0x9e   : > { %995 = vmatmul.msk.bf16.gmra.mxu2 %vm699_vm2, %v640_v45  ;;  %v628_v2 = vsel %vm610_vm1, %v487_v38, %v589_v41  ;;  %v472_v45 = vunpack.c.l.b16 %v344_v28  ;;  %v631_v3 = vsel %vm610_vm1, %v488_v19, %v591_v34 }
  0x9f   : > { %987 = vmatmul.msk.bf16.gmra.mxu0 %vm699_vm2, %v616_v13  ;;  %v321_v6 = vmin.f32 %v1572_v4, 0.0  ;;  %v305_v13 = vmin.f32 %v1039_v53, 0.0  ;;  %v464_v53 = vunpack.c.l.b16 %v336_v15 }
  0xa0   : > { %v493_v42 = vpack.c.b16 %v473_v0, %v472_v45 }
  0xa1   : > { %v353_v38 = vpack.c.bf16 %v321_v6, %v321_v6  ;;  %v337_v12 = vpack.c.bf16 %v305_v13, %v305_v13 }
  0xa3   : > { %v481_v48 = vunpack.c.l.b16 %v353_v38 }
  0xa4   : > { %v607_v14 = vpop.permute.xlu0 %606 }
  0xa5   : > { %v583_v18 = vpop.permute.xlu1 %582  ;;  %v655_v31 = vsel %vm610_vm1, %v496_v32, %v607_v14  ;;  %v585_v41 = vpop.permute.xlu2 %584  ;;  %v497_v49 = vpack.c.b16 %v481_v48, %v480_v23 }
  0xa6   : > { %999 = vmatmul.msk.bf16.gmra.mxu3 %vm699_vm2, %v652_v36  ;;  %v619_v57 = vsel %vm610_vm1, %v484_v30, %v583_v18  ;;  %v622_v16 = vsel %vm610_vm1, %v485_v56, %v585_v41  ;;  %v465_v36 = vunpack.c.l.b16 %v337_v12 }
  0xa7   : > { %991 = vmatmul.msk.bf16.gmra.mxu1 %vm699_vm2, %v628_v2  ;;  %v1474_v2 = vld [vmem:[%s1556_s2] ss:$0 sm:$0xff] }
  0xa8   : > { %v489_v43 = vpack.c.b16 %v465_v36, %v464_v53 }
  0xac   : > { %v601_v25 = vpop.permute.xlu0 %600 }
  0xad   : > { %v646_v52 = vsel %vm610_vm1, %v493_v42, %v601_v25  ;;  %v609_v27 = vpop.permute.xlu1 %608 }
  0xae   : > { %996 = vmatmul.msk.bf16.gmra.mxu2 %vm699_vm2, %v643_v40  ;;  %v658_v8 = vsel %vm610_vm1, %v497_v49, %v609_v27 }
  0xaf   : > { %988 = vmatmul.msk.bf16.gmra.mxu0 %vm699_vm2, %v619_v57 }
  0xb4   : > { %v593_v26 = vpop.permute.xlu0 %592 }
  0xb5   : > { %v634_v20 = vsel %vm610_vm1, %v489_v43, %v593_v26 }
  0xb6   : > { %1000 = vmatmul.msk.bf16.gmra.mxu3 %vm699_vm2, %v655_v31 }
  0xb7   : > { %992 = vmatmul.msk.bf16.gmra.mxu1 %vm699_vm2, %v631_v3 }
  0xbe   : > { %997 = vmatmul.msk.bf16.gmra.mxu2 %vm699_vm2, %v646_v52 }
  0xbf   : > { %989 = vmatmul.msk.bf16.gmra.mxu0 %vm699_vm2, %v622_v16 }
  0xc6   : > { %1001 = vmatmul.msk.bf16.gmra.mxu3 %vm699_vm2, %v658_v8 }
  0xc7   : > { %993 = vmatmul.msk.bf16.gmra.mxu1 %vm699_vm2, %v634_v20 }
 0x10c   : > { %v745_v9 = vpop.f32.mrf.mxu0 }
 0x10d   : > { %v746_v7 = vadd.f32 %v1474_v2, %v745_v9 }
 0x10f   : > { %825 = vst [vmem:[%s1479_s10] sm:$0xff] %v746_v7 }
 0x111   : > { %v785_v10 = vpop.f32.mrf.mxu2 }
 0x112   : > { %v786_v11 = vadd.f32 %v1474_v2, %v785_v10 }
 0x114   : > { %841 = vst [vmem:[%s1479_s10 + $0x80] sm:$0xff] %v786_v11  ;;  %v747_v50 = vpop.f32.mrf.mxu0  ;;  %v765_v21 = vpop.f32.mrf.mxu1 }
 0x115   : > { %v748_v17 = vadd.f32 %v1474_v2, %v747_v50  ;;  %v766_v22 = vadd.f32 %v1474_v2, %v765_v21 }
 0x117   : > { %826 = vst [vmem:[%s1479_s10 + $0x8] sm:$0xff] %v748_v17 }
 0x118   : > { %833 = vst [vmem:[%s1479_s10 + $0x40] sm:$0xff] %v766_v22 }
 0x119   : > { %v787_v30 = vpop.f32.mrf.mxu2  ;;  %v805_v18 = vpop.f32.mrf.mxu3 }
 0x11a   : > { %v788_v39 = vadd.f32 %v1474_v2, %v787_v30  ;;  %v806_v63 = vadd.f32 %v1474_v2, %v805_v18 }
 0x11c   : > { %842 = vst [vmem:[%s1479_s10 + $0x88] sm:$0xff] %v788_v39  ;;  %v767_v58 = vpop.f32.mrf.mxu1  ;;  %v750_v24 = vpop.f32.mrf.mxu0 }
 0x11d   : > { %849 = vst [vmem:[%s1479_s10 + $0xc0] sm:$0xff] %v806_v63  ;;  %v768_v35 = vadd.f32 %v1474_v2, %v767_v58  ;;  %v751_v40 = vadd.f32 %v1474_v2, %v750_v24 }
 0x11f   : > { %834 = vst [vmem:[%s1479_s10 + $0x48] sm:$0xff] %v768_v35 }
 0x120   : > { %827 = vst [vmem:[%s1479_s10 + $0x10] sm:$0xff] %v751_v40 }
 0x121   : > { %v790_v51 = vpop.f32.mrf.mxu2  ;;  %v807_v46 = vpop.f32.mrf.mxu3 }
 0x122   : > { %v791_v54 = vadd.f32 %v1474_v2, %v790_v51  ;;  %v808_v57 = vadd.f32 %v1474_v2, %v807_v46 }
 0x124   : > { %843 = vst [vmem:[%s1479_s10 + $0x90] sm:$0xff] %v791_v54  ;;  %v770_v60 = vpop.f32.mrf.mxu1  ;;  %v752_v61 = vpop.f32.mrf.mxu0 }
 0x125   : > { %850 = vst [vmem:[%s1479_s10 + $0xc8] sm:$0xff] %v808_v57  ;;  %v771_v14 = vadd.f32 %v1474_v2, %v770_v60  ;;  %v753_v28 = vadd.f32 %v1474_v2, %v752_v61 }
 0x127   : > { %835 = vst [vmem:[%s1479_s10 + $0x50] sm:$0xff] %v771_v14 }
 0x128   : > { %828 = vst [vmem:[%s1479_s10 + $0x18] sm:$0xff] %v753_v28 }
 0x129   : > { %v792_v29 = vpop.f32.mrf.mxu2  ;;  %v810_v19 = vpop.f32.mrf.mxu3 }
 0x12a   : > { %v793_v32 = vadd.f32 %v1474_v2, %v792_v29  ;;  %v811_v34 = vadd.f32 %v1474_v2, %v810_v19 }
 0x12c   : > { %844 = vst [vmem:[%s1479_s10 + $0x98] sm:$0xff] %v793_v32  ;;  %v772_v33 = vpop.f32.mrf.mxu1  ;;  %v755_v44 = vpop.f32.mrf.mxu0 }
 0x12d   : > { %851 = vst [vmem:[%s1479_s10 + $0xd0] sm:$0xff] %v811_v34  ;;  %v773_v45 = vadd.f32 %v1474_v2, %v772_v33  ;;  %v756_v0 = vadd.f32 %v1474_v2, %v755_v44 }
 0x12f   : > { %836 = vst [vmem:[%s1479_s10 + $0x58] sm:$0xff] %v773_v45 }
 0x130   : > { %829 = vst [vmem:[%s1479_s10 + $0x20] sm:$0xff] %v756_v0 }
 0x131   : > { %v795_v3 = vpop.f32.mrf.mxu2  ;;  %v812_v31 = vpop.f32.mrf.mxu3 }
 0x132   : > { %v796_v59 = vadd.f32 %v1474_v2, %v795_v3  ;;  %v813_v37 = vadd.f32 %v1474_v2, %v812_v31 }
 0x134   : > { %845 = vst [vmem:[%s1479_s10 + $0xa0] sm:$0xff] %v796_v59  ;;  %v775_v4 = vpop.f32.mrf.mxu1  ;;  %v757_v6 = vpop.f32.mrf.mxu0 }
 0x135   : > { %852 = vst [vmem:[%s1479_s10 + $0xd8] sm:$0xff] %v813_v37  ;;  %v776_v1 = vadd.f32 %v1474_v2, %v775_v4  ;;  %v758_v5 = vadd.f32 %v1474_v2, %v757_v6 }
 0x137   : > { %837 = vst [vmem:[%s1479_s10 + $0x60] sm:$0xff] %v776_v1 }
 0x138   : > { %830 = vst [vmem:[%s1479_s10 + $0x28] sm:$0xff] %v758_v5 }
 0x139   : > { %v797_v47 = vpop.f32.mrf.mxu2  ;;  %v815_v62 = vpop.f32.mrf.mxu3 }
 0x13a   : > { %v798_v13 = vadd.f32 %v1474_v2, %v797_v47  ;;  %v816_v25 = vadd.f32 %v1474_v2, %v815_v62 }
 0x13c   : > { %846 = vst [vmem:[%s1479_s10 + $0xa8] sm:$0xff] %v798_v13  ;;  %v777_v42 = vpop.f32.mrf.mxu1  ;;  %v760_v55 = vpop.f32.mrf.mxu0 }
 0x13d   : > { %853 = vst [vmem:[%s1479_s10 + $0xe0] sm:$0xff] %v816_v25  ;;  %v778_v38 = vadd.f32 %v1474_v2, %v777_v42  ;;  %v761_v56 = vadd.f32 %v1474_v2, %v760_v55 }
 0x13f   : > { %838 = vst [vmem:[%s1479_s10 + $0x68] sm:$0xff] %v778_v38 }
 0x140   : > { %831 = vst [vmem:[%s1479_s10 + $0x30] sm:$0xff] %v761_v56 }
 0x141   : > { %v800_v15 = vpop.f32.mrf.mxu2  ;;  %v817_v12 = vpop.f32.mrf.mxu3 }
 0x142   : > { %v801_v41 = vadd.f32 %v1474_v2, %v800_v15  ;;  %v818_v52 = vadd.f32 %v1474_v2, %v817_v12 }
 0x144   : > { %847 = vst [vmem:[%s1479_s10 + $0xb0] sm:$0xff] %v801_v41  ;;  %v780_v23 = vpop.f32.mrf.mxu1  ;;  %v762_v48 = vpop.f32.mrf.mxu0 }
 0x145   : > { %854 = vst [vmem:[%s1479_s10 + $0xe8] sm:$0xff] %v818_v52  ;;  %v781_v16 = vadd.f32 %v1474_v2, %v780_v23  ;;  %v763_v53 = vadd.f32 %v1474_v2, %v762_v48 }
 0x147   : > { %839 = vst [vmem:[%s1479_s10 + $0x70] sm:$0xff] %v781_v16 }
 0x148   : > { %832 = vst [vmem:[%s1479_s10 + $0x38] sm:$0xff] %v763_v53 }
 0x149   : > { %v802_v36 = vpop.f32.mrf.mxu2  ;;  %v820_v49 = vpop.f32.mrf.mxu3 }
 0x14a   : > { %v803_v27 = vadd.f32 %v1474_v2, %v802_v36  ;;  %v821_v43 = vadd.f32 %v1474_v2, %v820_v49 }
 0x14c   : > { %848 = vst [vmem:[%s1479_s10 + $0xb8] sm:$0xff] %v803_v27  ;;  %v782_v26 = vpop.f32.mrf.mxu1 }
 0x14d   : > { %855 = vst [vmem:[%s1479_s10 + $0xf0] sm:$0xff] %v821_v43  ;;  %v783_v8 = vadd.f32 %v1474_v2, %v782_v26 }
 0x14f   : > { %840 = vst [vmem:[%s1479_s10 + $0x78] sm:$0xff] %v783_v8 }
 0x151   : > { %v822_v20 = vpop.f32.mrf.mxu3 }
 0x152   : > { %v823_v9 = vadd.f32 %v1474_v2, %v822_v20 }
 0x154   : > { %856 = vst [vmem:[%s1479_s10 + $0xf8] sm:$0xff] %v823_v9 }
 0x155 PF: > { %s13_s14 = sadd.s32 1, %s1150_s14   ;;  %s1574_s12 = smov %s1146_s13 }
 0x156   : > { %p10_p5 = scmp.ge.s32.totalorder %s13_s14, 4   ;;  %s1575_s13 = smov %s1577_s15 }
 0x158   :  { %12 = sbr.rel (!%p10_p5) target bundleno = 2 (0x2), region = 68 }

</bundles_post_ra>
